<compile_context>
chip_gen: v7x
topology: tpu7x:2x2x1
jax: 0.10.0
libtpu: 0.0.40
codegen_flags: <defaults>
</compile_context>

<pallas_src>
import functools
import math

import jax
import jax.numpy as jnp
from jax.experimental import pallas as pl
from jax.experimental.pallas import tpu as pltpu


# ---------------------------------------------------------------------------
# Hardware-aware sizing
# ---------------------------------------------------------------------------

@functools.lru_cache(maxsize=None)
def _vmem_limit_bytes():
    """Per-kernel VMEM limit: half of physical VMEM, capped at 64 MiB."""
    cap = 64 * 1024 * 1024                      # conservative default (v7x per-core)
    try:
        info = pltpu.get_tpu_info()
        cap = int(getattr(info, "vmem_capacity_bytes", cap))
    except Exception:
        pass
    cap = max(cap, 32 * 1024 * 1024)
    return min(cap // 2, 64 * 1024 * 1024)


def _round_up(v, m):
    return -(-v // m) * m


def _plan_two_pass(n, feat, hw, block_budget):
    """Pick (n_blk, lane_tile, n_outer, n_hw) so one block is a few MiB of VMEM."""
    pad_feat = _round_up(feat, 8)               # f32 sublane padding
    bytes_per_lane = 2 * pad_feat * 4           # one lane column of one image (f32)
    max_lanes = max(128, block_budget // bytes_per_lane)
    if hw <= max_lanes:
        lane_tile = hw                          # full spatial extent (legal: == dim)
        n_hw = 1
    else:
        lane_tile = (max_lanes // 128) * 128
        # Prefer an exact multiple-of-128 divisor near the cap (no tail masking).
        t = lane_tile
        while t >= max(128, lane_tile // 2):
            if hw % t == 0:
                lane_tile = t
                break
            t -= 128
        n_hw = -(-hw // lane_tile)              # cdiv; tail tile handled by masking
    n_blk = 1
    if n_hw == 1:
        per_img = bytes_per_lane * lane_tile
        cap = max(1, block_budget // per_img)
        for d in range(min(n, cap), 0, -1):     # largest divisor of n that fits
            if n % d == 0:
                n_blk = d
                break
    n_outer = n // n_blk
    return n_blk, lane_tile, n_outer, n_hw


# ---------------------------------------------------------------------------
# Kernels
# ---------------------------------------------------------------------------

def _stats_kernel(x_ref, sum_ref, sq_ref, *, hw, lane_tile, need_mask):
    """Per-grid-step partial per-channel sum / sum-of-squares (no accumulation)."""
    x = x_ref[...].astype(jnp.float32)                       # (n_blk, 2, feat, L)
    if need_mask:                                            # tail lane tile only
        lane = jax.lax.broadcasted_iota(jnp.int32, (1, 1, 1, lane_tile), 3)
        limit = hw - pl.program_id(1) * lane_tile
        x = jnp.where(lane < limit, x, 0.0)
    sum_ref[...] = jnp.sum(x, axis=(0, 3))[:, None, :]       # (2, 1, feat)
    sq_ref[...] = jnp.sum(x * x, axis=(0, 3))[:, None, :]


def _norm_kernel(x_ref, coef_ref, o_ref):
    """out = a*x + b*x_partner + d with pre-folded per-channel coefficients."""
    x = x_ref[...].astype(jnp.float32)                       # (n_blk, 2, feat, L)
    c = coef_ref[...]                                        # (3, 2, feat, 1)
    x_r, x_i = x[:, 0:1], x[:, 1:2]                          # (n_blk, 1, feat, L)
    out_r = c[0, 0] * x_r + c[1, 0] * x_i + c[2, 0]
    out_i = c[0, 1] * x_i + c[1, 1] * x_r + c[2, 1]
    o_ref[:, 0:1] = out_r.astype(o_ref.dtype)
    o_ref[:, 1:2] = out_i.astype(o_ref.dtype)


def _fused_kernel(x_ref, grr_ref, gii_ref, beta_ref, o_ref, *, inv_count, eps):
    """Single-pass path: stats + coefficient fold + normalize, x read from HBM once."""
    x = x_ref[...].astype(jnp.float32)                       # (N, 2, feat, HW)
    mu = jnp.sum(x, axis=(0, 3))[..., None] * inv_count      # (2, feat, 1)
    ex2 = jnp.sum(x * x, axis=(0, 3))[..., None] * inv_count
    var = jnp.maximum(ex2 - mu * mu, 0.0)
    inv = jax.lax.rsqrt(var * 2.0 + eps)                     # (2, feat, 1)
    grr, gii, beta = grr_ref[...], gii_ref[...], beta_ref[...]
    a_r, a_i = grr * inv[0], grr * inv[1]
    b_r, b_i = -gii * inv[1], gii * inv[0]
    d_r = beta[0] - a_r * mu[0] - b_r * mu[1]
    d_i = beta[1] - a_i * mu[1] - b_i * mu[0]
    x_r, x_i = x[:, 0:1], x[:, 1:2]
    o_ref[:, 0:1] = (a_r * x_r + b_r * x_i + d_r).astype(o_ref.dtype)
    o_ref[:, 1:2] = (a_i * x_i + b_i * x_r + d_i).astype(o_ref.dtype)


# ---------------------------------------------------------------------------
# Wrapper
# ---------------------------------------------------------------------------

@functools.partial(jax.jit, static_argnames=("eps", "force_two_pass"))
def dc_bn4_forward(x_nchw, gamma_rr, gamma_ii, beta, *, eps=1e-5,
                   force_two_pass=False):
    """Forward pass of DC_Bn4 (training branch). NCHW in -> NCHW out."""
    if x_nchw.ndim != 4:
        raise ValueError("expected 4D NCHW input")
    n, c, h, w = x_nchw.shape
    if c % 2 != 0:
        raise ValueError("channel dim must be 2 * num_feature")
    feat = c // 2
    hw = h * w
    count = n * hw
    eps = float(eps)

    # Free reshape: channel axis split into (real|imag, feat); no transpose.
    x4 = x_nchw.reshape(n, 2, feat, hw)

    vmem_limit = _vmem_limit_bytes()
    pad_feat = _round_up(feat, 8)
    x_pad_f32_bytes = n * 2 * pad_feat * hw * 4

    # ---- fused single-pass path: whole activation comfortably in VMEM ----
    if (not force_two_pass) and x_pad_f32_bytes * 5 <= vmem_limit:
        grr = gamma_rr.astype(jnp.float32).reshape(feat, 1)
        gii = gamma_ii.astype(jnp.float32).reshape(feat, 1)
        beta2 = beta.astype(jnp.float32).reshape(2, feat, 1)
        out4 = pl.pallas_call(
            functools.partial(_fused_kernel, inv_count=1.0 / count, eps=eps),
            out_shape=jax.ShapeDtypeStruct((n, 2, feat, hw), x_nchw.dtype),
            compiler_params=pltpu.CompilerParams(vmem_limit_bytes=vmem_limit),
        )(x4, grr, gii, beta2)
        return out4.reshape(n, c, h, w)

    # ---- two-pass tiled path (large activations) ----
    block_budget = max(vmem_limit // 8, 2 * 1024 * 1024)
    n_blk, lane_tile, n_outer, n_hw = _plan_two_pass(n, feat, hw, block_budget)
    n_steps = n_outer * n_hw
    need_mask = (hw % lane_tile) != 0

    x_spec = pl.BlockSpec((n_blk, 2, feat, lane_tile), lambda i, j: (i, 0, 0, j))
    stat_spec = pl.BlockSpec((None, 2, 1, feat),
                             lambda i, j: (i * n_hw + j, 0, 0, 0))

    # Pass 1: per-step partial sums (both axes parallel -> megacore-friendly).
    sums, sqs = pl.pallas_call(
        functools.partial(_stats_kernel, hw=hw, lane_tile=lane_tile,
                          need_mask=need_mask),
        out_shape=(jax.ShapeDtypeStruct((n_steps, 2, 1, feat), jnp.float32),
                   jax.ShapeDtypeStruct((n_steps, 2, 1, feat), jnp.float32)),
        grid=(n_outer, n_hw),
        in_specs=[x_spec],
        out_specs=(stat_spec, stat_spec),
        compiler_params=pltpu.CompilerParams(
            dimension_semantics=("parallel", "parallel"),
            vmem_limit_bytes=vmem_limit),
    )(x4)

    # Tiny per-channel coefficient math (plain JAX on (2, feat) vectors).
    mu = jnp.sum(sums, axis=0)[:, 0, :] / count              # (2, feat)
    ex2 = jnp.sum(sqs, axis=0)[:, 0, :] / count
    var = jnp.maximum(ex2 - mu * mu, 0.0)
    inv = jax.lax.rsqrt(var * 2.0 + eps)

    grr1 = gamma_rr.astype(jnp.float32)
    gii1 = gamma_ii.astype(jnp.float32)
    beta1 = beta.astype(jnp.float32)
    a = jnp.stack([grr1 * inv[0], grr1 * inv[1]])            # multiplies same half
    b = jnp.stack([-gii1 * inv[1], gii1 * inv[0]])           # multiplies other half
    d = jnp.stack([beta1[:feat] - a[0] * mu[0] - b[0] * mu[1],
                   beta1[feat:] - a[1] * mu[1] - b[1] * mu[0]])
    coef = jnp.stack([a, b, d])[..., None]                   # (3, 2, feat, 1)

    # Pass 2: normalize + complex scale (fully parallel, lane-dense tiles).
    out4 = pl.pallas_call(
        _norm_kernel,
        out_shape=jax.ShapeDtypeStruct((n, 2, feat, hw), x_nchw.dtype),
        grid=(n_outer, n_hw),
        in_specs=[x_spec,
                  pl.BlockSpec((3, 2, feat, 1), lambda i, j: (0, 0, 0, 0))],
        out_specs=x_spec,
        compiler_params=pltpu.CompilerParams(
            dimension_semantics=("parallel", "parallel"),
            vmem_limit_bytes=vmem_limit),
    )(x4, coef)
    return out4.reshape(n, c, h, w)


# ---------------------------------------------------------------------------
# Pure-JAX reference (transcription of DC_Bn4.forward, training branch)
# ---------------------------------------------------------------------------

def _reference_forward(x_nchw, gamma_rr, gamma_ii, beta, *, eps=1e-5):
    n, c, h, w = x_nchw.shape
    feat = c // 2
    xr = jnp.transpose(x_nchw, (0, 2, 3, 1)).reshape(-1, c)
    mu = jnp.mean(xr, axis=0)
    xc = xr - mu
    var = jnp.mean(xc ** 2, axis=0)
    x_norm = xc / jnp.sqrt(var * 2.0 + eps)
    rn, imn = x_norm[:, :feat], x_norm[:, feat:]
    ro = gamma_rr * rn - gamma_ii * imn + beta[:feat]
    io = gamma_ii * rn + gamma_rr * imn + beta[feat:]
    out = jnp.concatenate([ro, io], axis=-1)
    return jnp.transpose(out.reshape(n, h, w, c), (0, 3, 1, 2))


if __name__ == "__main__":
    # Module config: num_feature=4 -> input channels = 2*num_feature = 8.
    num_feature = 4
    N, C, H, W = 2, 2 * num_feature, 16, 16
    eps = 1e-5

    key = jax.random.PRNGKey(0)
    kx, kr, ki, kb, kx2 = jax.random.split(key, 5)
    x = jax.random.normal(kx, (N, C, H, W), dtype=jnp.float32)

    # Parameters as in DC_Bn4.reset_parameters().
    gamma_rr = jnp.full((num_feature,), 1.0 / math.sqrt(2.0), dtype=jnp.float32)
    gamma_ii = jnp.full((num_feature,), 1.0 / math.sqrt(2.0), dtype=jnp.float32)
    beta = jnp.zeros((2 * num_feature,), dtype=jnp.float32)

    # 1) Small input -> fused single-pass path.
    out = jax.block_until_ready(dc_bn4_forward(x, gamma_rr, gamma_ii, beta, eps=eps))
    ref = _reference_forward(x, gamma_rr, gamma_ii, beta, eps=eps)
    assert out.shape == (N, C, H, W)
    assert jnp.allclose(out, ref, atol=5e-5, rtol=5e-5), \
        float(jnp.max(jnp.abs(out - ref)))

    # 2) Non-trivial parameters; exercise both the fused and forced two-pass paths.
    grr2 = jax.random.normal(kr, (num_feature,), dtype=jnp.float32)
    gii2 = jax.random.normal(ki, (num_feature,), dtype=jnp.float32)
    beta2 = jax.random.normal(kb, (2 * num_feature,), dtype=jnp.float32)
    ref2 = _reference_forward(x, grr2, gii2, beta2, eps=eps)
    out2f = jax.block_until_ready(dc_bn4_forward(x, grr2, gii2, beta2, eps=eps))
    assert jnp.allclose(out2f, ref2, atol=5e-5, rtol=5e-5), \
        float(jnp.max(jnp.abs(out2f - ref2)))
    out2t = jax.block_until_ready(
        dc_bn4_forward(x, grr2, gii2, beta2, eps=eps, force_two_pass=True))
    assert jnp.allclose(out2t, ref2, atol=5e-5, rtol=5e-5), \
        float(jnp.max(jnp.abs(out2t - ref2)))

    # 3) Larger activation -> tiled two-pass path chosen automatically
    #    (multi-step grid, parallel partial sums, multi-MiB blocks).
    N3, H3, W3 = 8, 256, 256
    x_big = jax.random.normal(kx2, (N3, C, H3, W3), dtype=jnp.float32)
    out3 = jax.block_until_ready(dc_bn4_forward(x_big, grr2, gii2, beta2, eps=eps))
    ref3 = _reference_forward(x_big, grr2, gii2, beta2, eps=eps)
    assert out3.shape == (N3, C, H3, W3)
    assert jnp.allclose(out3, ref3, atol=5e-4, rtol=5e-4), \
        float(jnp.max(jnp.abs(out3 - ref3)))

    print("KERNEL_OK")
</pallas_src>

<mosaic_0001>
module attributes {stable_mosaic.version = 11 : i64} {
  func.func @_fused_kernel(%arg0: memref<2x2x4x256xf32, #tpu.memory_space<vmem>>, %arg1: memref<4x1xf32, #tpu.memory_space<vmem>>, %arg2: memref<4x1xf32, #tpu.memory_space<vmem>>, %arg3: memref<2x4x1xf32, #tpu.memory_space<vmem>>, %arg4: memref<2x2x4x256xf32, #tpu.memory_space<vmem>>) attributes {dimension_semantics = [], scalar_prefetch = 0 : i64, scratch_operands = 0 : i64, tpu.core_type = #tpu.core_type<tc>} {
    %c0 = arith.constant 0 : index
    %c0_0 = arith.constant 0 : index
    %c0_1 = arith.constant 0 : index
    %c0_2 = arith.constant 0 : index
    %0 = vector.load %arg0[%c0, %c0_0, %c0_1, %c0_2] : memref<2x2x4x256xf32, #tpu.memory_space<vmem>>, vector<2x2x4x256xf32>
    %cst = arith.constant dense<0.000000e+00> : vector<2x4xf32>
    %1 = vector.multi_reduction <add>, %0, %cst [0, 3] : vector<2x2x4x256xf32> to vector<2x4xf32>
    %2 = vector.shape_cast %1 : vector<2x4xf32> to vector<2x4x1xf32>
    %cst_3 = arith.constant 0.001953125 : f32
    %3 = vector.broadcast %cst_3 : f32 to vector<2x4x1xf32>
    %4 = arith.mulf %2, %3 : vector<2x4x1xf32>
    %5 = arith.mulf %0, %0 : vector<2x2x4x256xf32>
    %cst_4 = arith.constant dense<0.000000e+00> : vector<2x4xf32>
    %6 = vector.multi_reduction <add>, %5, %cst_4 [0, 3] : vector<2x2x4x256xf32> to vector<2x4xf32>
    %7 = vector.shape_cast %6 : vector<2x4xf32> to vector<2x4x1xf32>
    %cst_5 = arith.constant 0.001953125 : f32
    %8 = vector.broadcast %cst_5 : f32 to vector<2x4x1xf32>
    %9 = arith.mulf %7, %8 : vector<2x4x1xf32>
    %10 = arith.mulf %4, %4 : vector<2x4x1xf32>
    %11 = arith.subf %9, %10 : vector<2x4x1xf32>
    %cst_6 = arith.constant 0.000000e+00 : f32
    %12 = vector.broadcast %cst_6 : f32 to vector<2x4x1xf32>
    %13 = arith.maximumf %11, %12 : vector<2x4x1xf32>
    %cst_7 = arith.constant 2.000000e+00 : f32
    %14 = vector.broadcast %cst_7 : f32 to vector<2x4x1xf32>
    %15 = arith.mulf %13, %14 : vector<2x4x1xf32>
    %cst_8 = arith.constant 9.99999974E-6 : f32
    %16 = vector.broadcast %cst_8 : f32 to vector<2x4x1xf32>
    %17 = arith.addf %15, %16 : vector<2x4x1xf32>
    %18 = math.rsqrt %17 : vector<2x4x1xf32>
    %c0_9 = arith.constant 0 : index
    %c0_10 = arith.constant 0 : index
    %19 = vector.load %arg1[%c0_9, %c0_10] : memref<4x1xf32, #tpu.memory_space<vmem>>, vector<4x1xf32>
    %c0_11 = arith.constant 0 : index
    %c0_12 = arith.constant 0 : index
    %20 = vector.load %arg2[%c0_11, %c0_12] : memref<4x1xf32, #tpu.memory_space<vmem>>, vector<4x1xf32>
    %c0_13 = arith.constant 0 : index
    %c0_14 = arith.constant 0 : index
    %c0_15 = arith.constant 0 : index
    %21 = vector.load %arg3[%c0_13, %c0_14, %c0_15] : memref<2x4x1xf32, #tpu.memory_space<vmem>>, vector<2x4x1xf32>
    %22 = vector.extract_strided_slice %18 {offsets = [0, 0, 0], sizes = [1, 4, 1], strides = [1, 1, 1]} : vector<2x4x1xf32> to vector<1x4x1xf32>
    %23 = vector.shape_cast %22 : vector<1x4x1xf32> to vector<4x1xf32>
    %24 = arith.mulf %19, %23 : vector<4x1xf32>
    %25 = vector.extract_strided_slice %18 {offsets = [1, 0, 0], sizes = [1, 4, 1], strides = [1, 1, 1]} : vector<2x4x1xf32> to vector<1x4x1xf32>
    %26 = vector.shape_cast %25 : vector<1x4x1xf32> to vector<4x1xf32>
    %27 = arith.mulf %19, %26 : vector<4x1xf32>
    %cst_16 = arith.constant 0.000000e+00 : f32
    %28 = vector.broadcast %cst_16 : f32 to vector<4x1xf32>
    %29 = arith.subf %28, %20 : vector<4x1xf32>
    %30 = vector.extract_strided_slice %18 {offsets = [1, 0, 0], sizes = [1, 4, 1], strides = [1, 1, 1]} : vector<2x4x1xf32> to vector<1x4x1xf32>
    %31 = vector.shape_cast %30 : vector<1x4x1xf32> to vector<4x1xf32>
    %32 = arith.mulf %29, %31 : vector<4x1xf32>
    %33 = vector.extract_strided_slice %18 {offsets = [0, 0, 0], sizes = [1, 4, 1], strides = [1, 1, 1]} : vector<2x4x1xf32> to vector<1x4x1xf32>
    %34 = vector.shape_cast %33 : vector<1x4x1xf32> to vector<4x1xf32>
    %35 = arith.mulf %20, %34 : vector<4x1xf32>
    %36 = vector.extract_strided_slice %21 {offsets = [0, 0, 0], sizes = [1, 4, 1], strides = [1, 1, 1]} : vector<2x4x1xf32> to vector<1x4x1xf32>
    %37 = vector.shape_cast %36 : vector<1x4x1xf32> to vector<4x1xf32>
    %38 = vector.extract_strided_slice %4 {offsets = [0, 0, 0], sizes = [1, 4, 1], strides = [1, 1, 1]} : vector<2x4x1xf32> to vector<1x4x1xf32>
    %39 = vector.shape_cast %38 : vector<1x4x1xf32> to vector<4x1xf32>
    %40 = arith.mulf %24, %39 : vector<4x1xf32>
    %41 = arith.subf %37, %40 : vector<4x1xf32>
    %42 = vector.extract_strided_slice %4 {offsets = [1, 0, 0], sizes = [1, 4, 1], strides = [1, 1, 1]} : vector<2x4x1xf32> to vector<1x4x1xf32>
    %43 = vector.shape_cast %42 : vector<1x4x1xf32> to vector<4x1xf32>
    %44 = arith.mulf %32, %43 : vector<4x1xf32>
    %45 = arith.subf %41, %44 : vector<4x1xf32>
    %46 = vector.extract_strided_slice %21 {offsets = [1, 0, 0], sizes = [1, 4, 1], strides = [1, 1, 1]} : vector<2x4x1xf32> to vector<1x4x1xf32>
    %47 = vector.shape_cast %46 : vector<1x4x1xf32> to vector<4x1xf32>
    %48 = vector.extract_strided_slice %4 {offsets = [1, 0, 0], sizes = [1, 4, 1], strides = [1, 1, 1]} : vector<2x4x1xf32> to vector<1x4x1xf32>
    %49 = vector.shape_cast %48 : vector<1x4x1xf32> to vector<4x1xf32>
    %50 = arith.mulf %27, %49 : vector<4x1xf32>
    %51 = arith.subf %47, %50 : vector<4x1xf32>
    %52 = vector.extract_strided_slice %4 {offsets = [0, 0, 0], sizes = [1, 4, 1], strides = [1, 1, 1]} : vector<2x4x1xf32> to vector<1x4x1xf32>
    %53 = vector.shape_cast %52 : vector<1x4x1xf32> to vector<4x1xf32>
    %54 = arith.mulf %35, %53 : vector<4x1xf32>
    %55 = arith.subf %51, %54 : vector<4x1xf32>
    %56 = vector.extract_strided_slice %0 {offsets = [0, 0, 0, 0], sizes = [2, 1, 4, 256], strides = [1, 1, 1, 1]} : vector<2x2x4x256xf32> to vector<2x1x4x256xf32>
    %57 = vector.extract_strided_slice %0 {offsets = [0, 1, 0, 0], sizes = [2, 1, 4, 256], strides = [1, 1, 1, 1]} : vector<2x2x4x256xf32> to vector<2x1x4x256xf32>
    %58 = vector.shape_cast %24 : vector<4x1xf32> to vector<1x1x4x1xf32>
    %59 = vector.broadcast %58 : vector<1x1x4x1xf32> to vector<2x1x4x256xf32>
    %60 = arith.mulf %59, %56 : vector<2x1x4x256xf32>
    %61 = vector.shape_cast %32 : vector<4x1xf32> to vector<1x1x4x1xf32>
    %62 = vector.broadcast %61 : vector<1x1x4x1xf32> to vector<2x1x4x256xf32>
    %63 = arith.mulf %62, %57 : vector<2x1x4x256xf32>
    %64 = arith.addf %60, %63 : vector<2x1x4x256xf32>
    %65 = vector.shape_cast %45 : vector<4x1xf32> to vector<1x1x4x1xf32>
    %66 = vector.broadcast %65 : vector<1x1x4x1xf32> to vector<2x1x4x256xf32>
    %67 = arith.addf %64, %66 : vector<2x1x4x256xf32>
    %c0_17 = arith.constant 0 : index
    %c0_18 = arith.constant 0 : index
    %c0_19 = arith.constant 0 : index
    %c0_20 = arith.constant 0 : index
    %68 = vector.load %arg4[%c0_17, %c0_18, %c0_19, %c0_20] : memref<2x2x4x256xf32, #tpu.memory_space<vmem>>, vector<2x1x4x256xf32>
    tpu.vector_store %arg4[%c0_17, %c0_18, %c0_19, %c0_20], %67 {strides = array<i32>} : memref<2x2x4x256xf32, #tpu.memory_space<vmem>>, vector<2x1x4x256xf32>,
    %69 = vector.shape_cast %27 : vector<4x1xf32> to vector<1x1x4x1xf32>
    %70 = vector.broadcast %69 : vector<1x1x4x1xf32> to vector<2x1x4x256xf32>
    %71 = arith.mulf %70, %57 : vector<2x1x4x256xf32>
    %72 = vector.shape_cast %35 : vector<4x1xf32> to vector<1x1x4x1xf32>
    %73 = vector.broadcast %72 : vector<1x1x4x1xf32> to vector<2x1x4x256xf32>
    %74 = arith.mulf %73, %56 : vector<2x1x4x256xf32>
    %75 = arith.addf %71, %74 : vector<2x1x4x256xf32>
    %76 = vector.shape_cast %55 : vector<4x1xf32> to vector<1x1x4x1xf32>
    %77 = vector.broadcast %76 : vector<1x1x4x1xf32> to vector<2x1x4x256xf32>
    %78 = arith.addf %75, %77 : vector<2x1x4x256xf32>
    %c0_21 = arith.constant 0 : index
    %c1 = arith.constant 1 : index
    %c0_22 = arith.constant 0 : index
    %c0_23 = arith.constant 0 : index
    %79 = vector.load %arg4[%c0_21, %c1, %c0_22, %c0_23] : memref<2x2x4x256xf32, #tpu.memory_space<vmem>>, vector<2x1x4x256xf32>
    tpu.vector_store %arg4[%c0_21, %c1, %c0_22, %c0_23], %78 {strides = array<i32>} : memref<2x2x4x256xf32, #tpu.memory_space<vmem>>, vector<2x1x4x256xf32>,
    return
  }
}

</mosaic_0001>

<bundles_post_ra>
// kernel: dc_bn4_forward.1
= control target key start
LH: loop header
LB: loop body
LE: loop exit
PB: predicated region body
PF: predicated region fallthrough
CT: control target
= control target key end

     0   :  { %vm33_vm0 = vcmask 1043456   ;;  %v219_v44 = vmov 0   ;;  %s353_s0 = inlined_call_operand.vmem [shape: f32[2,2,4,256], index: 0, kind: input, shape index: {}]   ;;  %s354_s1 = inlined_call_operand.vmem [shape: f32[4,1], index: 1, kind: input, shape index: {}]   ;;  %s355_s2 = inlined_call_operand.vmem [shape: f32[4,1], index: 2, kind: input, shape index: {}]   ;;  %s356_s3 = inlined_call_operand.vmem [shape: f32[2,4,1], index: 3, kind: input, shape index: {}]   ;;  %s357_s4 = inlined_call_operand.vmem [shape: f32[2,2,4,256], index: 4, kind: output, shape index: {}]  }
   0x1   :  { %v248_v0 = vld [vmem:[%s353_s0] sm:$0xff]  ;;  %v253_v1 = vld [vmem:[%s353_s0 + $0x10] sm:$0xff]  ;;  %v258_v2 = vld [vmem:[%s353_s0 + $0x8] sm:$0xff]  ;;  %209 = vset.pattern.permute.xlu0 %v219_v44  ;;  %210 = vset.pattern.permute.xlu1 %v219_v44 }
   0x2   :  { %v262_v3 = vcombine.high %v248_v0, %v248_v0  ;;  %v266_v4 = vcombine.high %v253_v1, %v253_v1  ;;  %v34_v5 = vsel %vm33_vm0, %v248_v0, 0.0  ;;  %v273_v6 = vld [vmem:[%s353_s0 + $0x18] sm:$0xff]  ;;  %v54_v7 = vmul.f32 %v248_v0, %v248_v0  ;;  %v102_v63 = vld [vmem:[%s354_s1] sm:$0xf] }
   0x3   :  { %v56_v8 = vmul.f32 %v253_v1, %v253_v1  ;;  %v281_v9 = vcombine.high %v258_v2, %v258_v2  ;;  %v285_v10 = vcombine.high %v273_v6, %v273_v6  ;;  %v37_v12 = vsel %vm33_vm0, %v253_v1, 0.0 }
   0x4   :  { %v35_v11 = vsel %vm33_vm0, %v262_v3, 0.0  ;;  %v39_v13 = vsel %vm33_vm0, %v266_v4, 0.0  ;;  %v43_v14 = vsel %vm33_vm0, %v258_v2, 0.0  ;;  %v62_v16 = vcombine.high %v54_v7, %v54_v7 }
   0x5   :  { %v36_v15 = vadd.f32 %v35_v11, %v34_v5  ;;  %v64_v17 = vcombine.high %v56_v8, %v56_v8  ;;  %v70_v18 = vsel %vm33_vm0, %v54_v7, 0.0  ;;  %v73_v19 = vsel %vm33_vm0, %v56_v8, 0.0  ;;  %v103_v7 = vld [vmem:[%s355_s2] sm:$0xf] }
   0x6   :  { %v44_v20 = vsel %vm33_vm0, %v281_v9, 0.0  ;;  %v46_v21 = vsel %vm33_vm0, %v273_v6, 0.0  ;;  %v55_v22 = vmul.f32 %v258_v2, %v258_v2  ;;  %v71_v24 = vsel %vm33_vm0, %v62_v16, 0.0  ;;  %v104_v16 = vld [vmem:[%s356_s3] sm:$0xf] }
   0x7   :  { %v38_v23 = vadd.f32 %v37_v12, %v36_v15  ;;  %v45_v25 = vadd.f32 %v44_v20, %v43_v14  ;;  %v48_v26 = vsel %vm33_vm0, %v285_v10, 0.0  ;;  %v72_v27 = vadd.f32 %v71_v24, %v70_v18  ;;  %v105_v20 = vld [vmem:[%s356_s3 + $0x4] sm:$0xf] }
   0x8   :  { %v57_v28 = vmul.f32 %v273_v6, %v273_v6  ;;  %v63_v29 = vcombine.high %v55_v22, %v55_v22  ;;  %v79_v30 = vsel %vm33_vm0, %v55_v22, 0.0  ;;  %v75_v32 = vsel %vm33_vm0, %v64_v17, 0.0 }
   0x9   :  { %v40_v31 = vadd.f32 %v39_v13, %v38_v23  ;;  %v47_v33 = vadd.f32 %v46_v21, %v45_v25  ;;  %v74_v34 = vadd.f32 %v73_v19, %v72_v27  ;;  %v108_v11 = vsub.f32 0.0, %v103_v7 }
   0xa   :  { %v65_v35 = vcombine.high %v57_v28, %v57_v28  ;;  %v80_v36 = vsel %vm33_vm0, %v63_v29, 0.0  ;;  %v82_v37 = vsel %vm33_vm0, %v57_v28, 0.0 }
   0xb   :  { %41 = vadd.xlane.f32.xlu0 %v40_v31  ;;  %v49_v38 = vadd.f32 %v48_v26, %v47_v33  ;;  %v81_v39 = vadd.f32 %v80_v36, %v79_v30  ;;  %v76_v40 = vadd.f32 %v75_v32, %v74_v34 }
   0xc   :  { %v84_v41 = vsel %vm33_vm0, %v65_v35, 0.0 }
   0xd   :  { %v83_v42 = vadd.f32 %v82_v37, %v81_v39  ;;  %77 = vadd.xlane.f32.xlu1 %v76_v40 }
   0xf   :  { %50 = vadd.xlane.f32.xlu0 %v49_v38  ;;  %v85_v43 = vadd.f32 %v84_v41, %v83_v42 }
  0x11   :  { %86 = vadd.xlane.f32.xlu1 %v85_v43 }
  0x98   :  { %v42_v45 = vpop.xlane.xlu0 %41 }
  0x99   :  { %v52_v46 = vmul.f32 0.001953125, %v42_v45 }
  0x9a   :  { %v78_v47 = vpop.xlane.xlu1 %77 }
  0x9b   :  { %v90_v48 = vmul.f32 %v52_v46, %v52_v46  ;;  %v88_v49 = vmul.f32 0.001953125, %v78_v47 }
  0x9c   :  { %v51_v50 = vpop.xlane.xlu0 %50 }
  0x9d   :  { %v53_v51 = vmul.f32 0.001953125, %v51_v50  ;;  %v92_v52 = vsub.f32 %v88_v49, %v90_v48 }
  0x9e   :  { %v87_v53 = vpop.xlane.xlu1 %86 }
  0x9f   :  { %v91_v54 = vmul.f32 %v53_v51, %v53_v51  ;;  %v94_v55 = vmax.f32 %v92_v52, 0.0  ;;  %v89_v56 = vmul.f32 0.001953125, %v87_v53 }
  0xa1   :  { %v96_v57 = vmul.f32 2.0, %v94_v55  ;;  %v93_v58 = vsub.f32 %v89_v56, %v91_v54 }
  0xa3   :  { %v98_v59 = vadd.f32 1e-05, %v96_v57  ;;  %v95_v60 = vmax.f32 %v93_v58, 0.0 }
  0xa5   :  { %215 = vrsqrt.f32 %v98_v59  ;;  %v97_v61 = vmul.f32 2.0, %v95_v60 }
  0xa7   :  { %v99_v62 = vadd.f32 1e-05, %v97_v61 }
  0xa9   :  { %217 = vrsqrt.f32 %v99_v62 }
  0xaf   :  { %v216_v5 = vpop.eup %215 }
  0xb0   :  { %v106_v8 = vmul.f32 %v216_v5, %v102_v63  ;;  %v110_v18 = vmul.f32 %v216_v5, %v103_v7 }
  0xb2   :  { %121 = vperm.xlu0 %209, %v106_v8   ;;  %v111_v15 = vmul.f32 %v106_v8, %v52_v46  ;;  %v117_v24 = vmul.f32 %v110_v18, %v52_v46 }
  0xb3   :  { %v218_v12 = vpop.eup %217 }
  0xb4   :  { %v109_v13 = vmul.f32 %v218_v12, %v108_v11  ;;  %v107_v14 = vmul.f32 %v218_v12, %v102_v63  ;;  %v112_v21 = vsub.f32 %v104_v16, %v111_v15 }
  0xb6   :  { %130 = vperm.xlu1 %210, %v109_v13   ;;  %v115_v17 = vmul.f32 %v107_v14, %v53_v51  ;;  %v113_v19 = vmul.f32 %v109_v13, %v53_v51 }
  0xb8   :  { %v114_v22 = vsub.f32 %v112_v21, %v113_v19  ;;  %v116_v23 = vsub.f32 %v105_v20, %v115_v17 }
  0xba   :  { %162 = vperm.xlu1 %210, %v107_v14   ;;  %v118_v25 = vsub.f32 %v116_v23, %v117_v24 }
  0xbe   :  { %171 = vperm.xlu1 %210, %v110_v18  }
  0xc2   :  { %143 = vperm.xlu1 %210, %v114_v22  }
  0xc6   :  { %184 = vperm.xlu1 %210, %v118_v25  }
 0x131   :  { %v122_v28 = vpop.permute.xlu0 %121 }
 0x132   :  { %v124_v33 = vmul.f32 %v122_v28, %v248_v0  ;;  %v125_v34 = vmul.f32 %v122_v28, %v262_v3  ;;  %v126_v36 = vmul.f32 %v122_v28, %v253_v1  ;;  %v127_v37 = vmul.f32 %v122_v28, %v266_v4 }
 0x135   :  { %v131_v26 = vpop.permute.xlu1 %130 }
 0x136   :  { %v133_v29 = vmul.f32 %v131_v26, %v258_v2  ;;  %v134_v30 = vmul.f32 %v131_v26, %v281_v9  ;;  %v135_v31 = vmul.f32 %v131_v26, %v273_v6  ;;  %v136_v32 = vmul.f32 %v131_v26, %v285_v10 }
 0x138   :  { %v137_v40 = vadd.f32 %v133_v29, %v124_v33  ;;  %v138_v41 = vadd.f32 %v134_v30, %v125_v34  ;;  %v139_v44 = vadd.f32 %v135_v31, %v126_v36  ;;  %v140_v45 = vadd.f32 %v136_v32, %v127_v37 }
 0x139   :  { %v163_v27 = vpop.permute.xlu1 %162 }
 0x13a   :  { %v165_v46 = vmul.f32 %v163_v27, %v258_v2  ;;  %v166_v47 = vmul.f32 %v163_v27, %v281_v9  ;;  %v167_v48 = vmul.f32 %v163_v27, %v273_v6  ;;  %v168_v49 = vmul.f32 %v163_v27, %v285_v10 }
 0x13d   :  { %v172_v35 = vpop.permute.xlu1 %171 }
 0x13e   :  { %v174_v38 = vmul.f32 %v172_v35, %v248_v0  ;;  %v175_v39 = vmul.f32 %v172_v35, %v262_v3  ;;  %v176_v42 = vmul.f32 %v172_v35, %v253_v1  ;;  %v177_v43 = vmul.f32 %v172_v35, %v266_v4 }
 0x140   :  { %v178_v53 = vadd.f32 %v174_v38, %v165_v46  ;;  %v179_v54 = vadd.f32 %v175_v39, %v166_v47  ;;  %v180_v4 = vadd.f32 %v176_v42, %v167_v48  ;;  %v181_v56 = vadd.f32 %v177_v43, %v168_v49 }
 0x141   :  { %v144_v50 = vpop.permute.xlu1 %143 }
 0x142   :  { %v146_v0 = vadd.f32 %v144_v50, %v137_v40  ;;  %v147_v51 = vadd.f32 %v144_v50, %v138_v41  ;;  %v148_v3 = vadd.f32 %v144_v50, %v139_v44  ;;  %v149_v52 = vadd.f32 %v144_v50, %v140_v45 }
 0x144   :  { %v154_v1 = vcombine.low %v146_v0, %v147_v51  ;;  %v155_v55 = vcombine.low %v148_v3, %v149_v52 }
 0x145   :  { %v185_v57 = vpop.permute.xlu1 %184 }
 0x146   :  { %158 = vst [vmem:[%s357_s4] sm:$0xff] %v154_v1  ;;  %159 = vst [vmem:[%s357_s4 + $0x10] sm:$0xff] %v155_v55  ;;  %v187_v2 = vadd.f32 %v185_v57, %v178_v53  ;;  %v188_v6 = vadd.f32 %v185_v57, %v179_v54  ;;  %v189_v9 = vadd.f32 %v185_v57, %v180_v4 }
 0x147   :  { %v190_v10 = vadd.f32 %v185_v57, %v181_v56 }
 0x148   :  { %v195_v58 = vcombine.low %v187_v2, %v188_v6 }
 0x149   :  { %v196_v59 = vcombine.low %v189_v9, %v190_v10 }
 0x14a   :  { %206 = vst [vmem:[%s357_s4 + $0x8] sm:$0xff] %v195_v58 }
 0x14b   :  { %207 = vst [vmem:[%s357_s4 + $0x18] sm:$0xff] %v196_v59 }

</bundles_post_ra>
